<compile_context>
chip_gen: v7x
topology: tpu7x:2x2x1
jax: 0.10.0
libtpu: 0.0.40
codegen_flags: <defaults>
</compile_context>

<pallas_src>
import functools

import jax
import jax.numpy as jnp
from jax.experimental import pallas as pl
from jax.experimental.pallas import tpu as pltpu


def _round_up(n, m):
    return (n + m - 1) // m * m


# -----------------------------------------------------------------------------
# Kernel
# -----------------------------------------------------------------------------
def _multi_head_mlp_kernel(x_ref, w_ref, wo_ref, out_ref, *,
                           input_dim, hidden_dim, num_targets,
                           num_hidden_layers, off_bh, off_w0, off_wh):
    D, H, T = input_dim, hidden_dim, num_targets
    L1 = num_hidden_layers - 1
    TH = T * H
    w_dtype = w_ref.dtype

    # All bias rows live in the first (aligned) block of the slab; load once and
    # slice at value level (avoids any unaligned single-row ref loads).
    bias_rows = w_ref[0:off_w0, :].astype(jnp.float32)          # (off_w0, T*H)
    b0 = bias_rows[0:1, :]                                       # (1, T*H)

    # ---- layer 0, fused across all heads: (B, D) @ (D, T*H) -> (B, T*H) ----
    x = x_ref[...].astype(w_dtype)
    w0 = w_ref[off_w0:off_w0 + D, :]                             # (D, T*H)
    h = jnp.dot(x, w0, preferred_element_type=jnp.float32)
    h = jnp.maximum(h + b0, 0.0)                                 # (B, T*H) f32

    # ---- remaining hidden layers: per-head (B,H)@(H,H) chains (static unroll) --
    for l in range(L1):
        bh = bias_rows[off_bh + l:off_bh + l + 1, :]             # (1, T*H)
        cols = []
        for t in range(T):
            wt = w_ref[off_wh + l * H:off_wh + (l + 1) * H,
                       t * H:(t + 1) * H]                        # (H, H), aligned
            cols.append(jnp.dot(h[:, t * H:(t + 1) * H].astype(w_dtype), wt,
                                preferred_element_type=jnp.float32))
        h = jnp.concatenate(cols, axis=-1)                       # lane-aligned concat
        h = jnp.maximum(h + bh, 0.0)                             # (B, T*H) f32

    # ---- output: block-diagonal (T*H, T) MXU matmul + bias -> (B, T) ----------
    wo_all = wo_ref[...]                                         # (T*H + 1, T)
    y = jnp.dot(h.astype(w_dtype), wo_all[:TH, :],
                preferred_element_type=jnp.float32)
    y = y + wo_all[TH:TH + 1, :].astype(jnp.float32)
    out_ref[...] = y.astype(out_ref.dtype)                       # single dense store


# -----------------------------------------------------------------------------
# One-time packing (do at param-load time, NOT per forward)
# -----------------------------------------------------------------------------
def pack_params(raw, *, dtype=jnp.bfloat16):
    """Pack raw per-head weights into the kernel's two VMEM slabs."""
    w0, b0, wh, bh, wo, bo = (raw["w0"], raw["b0"], raw["wh"], raw["bh"],
                              raw["wo"], raw["bo"])
    T, D, H = w0.shape
    L1 = wh.shape[1]
    TH = T * H

    align = 16  # bf16 sublane tile is (16, 128): keep every section 16-row aligned
    off_bh = 1
    off_w0 = _round_up(1 + L1, align)
    off_wh = off_w0 + _round_up(D, align)
    rows = off_wh + L1 * H

    w_slab = jnp.zeros((rows, TH), jnp.float32)
    w_slab = w_slab.at[0].set(b0.reshape(TH))                                # b0
    w_slab = w_slab.at[off_bh:off_bh + L1].set(
        jnp.transpose(bh, (1, 0, 2, 3)).reshape(L1, TH))                     # bh
    w_slab = w_slab.at[off_w0:off_w0 + D].set(
        jnp.transpose(w0, (1, 0, 2)).reshape(D, TH))                         # w0 fused
    for l in range(L1):
        for t in range(T):
            w_slab = w_slab.at[off_wh + l * H:off_wh + (l + 1) * H,
                               t * H:(t + 1) * H].set(wh[t, l])              # wh blocks

    wo_slab = jnp.zeros((TH + 1, T), jnp.float32)
    for t in range(T):
        wo_slab = wo_slab.at[t * H:(t + 1) * H, t].set(wo[t, :, 0])          # block-diag
    wo_slab = wo_slab.at[TH].set(bo.reshape(T))                              # bo row

    meta = dict(input_dim=D, hidden_dim=H, num_targets=T,
                num_hidden_layers=L1 + 1,
                off_bh=off_bh, off_w0=off_w0, off_wh=off_wh)
    return dict(w_slab=w_slab.astype(dtype),
                wo_slab=wo_slab.astype(dtype),
                meta=meta)


# -----------------------------------------------------------------------------
# Wrapper (no per-call repacking; just the pallas_call)
# -----------------------------------------------------------------------------
def multi_target_prediction_head(x, packed):
    """x: (B, input_dim). Returns (B, num_targets) == torch.cat([head(x)], dim=1)."""
    meta = packed["meta"]
    w_slab, wo_slab = packed["w_slab"], packed["wo_slab"]
    B = x.shape[0]
    D, H, T = meta["input_dim"], meta["hidden_dim"], meta["num_targets"]
    L = meta["num_hidden_layers"]
    L1 = L - 1
    TH = T * H

    flops = 2 * B * D * TH + L1 * T * 2 * B * H * H + 2 * B * TH * T
    bytes_accessed = (x.size * x.dtype.itemsize
                      + w_slab.size * w_slab.dtype.itemsize
                      + wo_slab.size * wo_slab.dtype.itemsize
                      + B * T * x.dtype.itemsize)

    vmem = pl.BlockSpec(memory_space=pltpu.MemorySpace.VMEM)
    # NOTE(v7x): at production batch sizes add a leading batch grid axis with
    # dimension_semantics=("parallel",) to engage the 2nd TensorCore; at B=8 the
    # per-step overhead exceeds the work, so stay grid-less.
    return pl.pallas_call(
        functools.partial(_multi_head_mlp_kernel,
                          input_dim=D, hidden_dim=H, num_targets=T,
                          num_hidden_layers=L,
                          off_bh=meta["off_bh"], off_w0=meta["off_w0"],
                          off_wh=meta["off_wh"]),
        out_shape=jax.ShapeDtypeStruct((B, T), x.dtype),
        in_specs=[vmem, vmem, vmem],
        out_specs=vmem,
        cost_estimate=pl.CostEstimate(flops=flops, transcendentals=0,
                                      bytes_accessed=bytes_accessed),
    )(x, w_slab, wo_slab)


# -----------------------------------------------------------------------------
# Raw (PyTorch-layout) parameters + pure-JAX reference
# -----------------------------------------------------------------------------
def init_raw_params(key, *, input_dim, num_targets, hidden_dim,
                    num_hidden_layers):
    """Deterministic synthetic parameters (shapes match the PyTorch module), f32."""
    ks = jax.random.split(key, 6)
    T, D, H, L1 = num_targets, input_dim, hidden_dim, num_hidden_layers - 1
    s_in = 1.0 / jnp.sqrt(D)
    s_h = 1.0 / jnp.sqrt(H)
    return dict(
        w0=jax.random.normal(ks[0], (T, D, H), jnp.float32) * s_in,
        b0=jax.random.normal(ks[1], (T, 1, H), jnp.float32) * s_in,
        wh=jax.random.normal(ks[2], (T, L1, H, H), jnp.float32) * s_h,
        bh=jax.random.normal(ks[3], (T, L1, 1, H), jnp.float32) * s_h,
        wo=jax.random.normal(ks[4], (T, H, 1), jnp.float32) * s_h,
        bo=jax.random.normal(ks[5], (T, 1, 1), jnp.float32) * s_h,
    )


def _reference(x, raw, num_hidden_layers, compute_dtype):
    """Pure-JAX replica of the PyTorch forward, mirroring the kernel's casts
    (weights/activations cast to compute_dtype at matmul inputs, f32 accum)."""
    T = raw["w0"].shape[0]
    outs = []
    for t in range(T):
        w0 = raw["w0"][t].astype(compute_dtype)
        b0 = raw["b0"][t].astype(compute_dtype).astype(jnp.float32)
        h = jnp.dot(x.astype(compute_dtype), w0,
                    preferred_element_type=jnp.float32)
        h = jnp.maximum(h + b0, 0.0)
        for l in range(num_hidden_layers - 1):
            wl = raw["wh"][t, l].astype(compute_dtype)
            bl = raw["bh"][t, l].astype(compute_dtype).astype(jnp.float32)
            h = jnp.dot(h.astype(compute_dtype), wl,
                        preferred_element_type=jnp.float32)
            h = jnp.maximum(h + bl, 0.0)
        wo = raw["wo"][t].astype(compute_dtype)
        bo = raw["bo"][t].astype(compute_dtype).astype(jnp.float32)
        outs.append(jnp.dot(h.astype(compute_dtype), wo,
                            preferred_element_type=jnp.float32) + bo)
    return jnp.concatenate(outs, axis=1).astype(x.dtype)        # (B, T)


if __name__ == "__main__":
    B = 8               # batch
    INPUT_DIM = 32      # input_dim
    HIDDEN = 128        # pred_hidden_dim (module default)
    NUM_LAYERS = 3      # pred_num_hidden_layers (module default)
    NUM_TARGETS = 3     # pred_num_targets
    W_DTYPE = jnp.bfloat16   # native single-pass MXU on v5e/v6e/v7x

    key = jax.random.PRNGKey(0)
    kx, kp = jax.random.split(key)
    x = jax.random.normal(kx, (B, INPUT_DIM), jnp.float32)
    raw = init_raw_params(kp, input_dim=INPUT_DIM, num_targets=NUM_TARGETS,
                          hidden_dim=HIDDEN, num_hidden_layers=NUM_LAYERS)

    # Pack once (param-load time), reuse for every forward.
    packed = pack_params(raw, dtype=W_DTYPE)
    packed = jax.tree_util.tree_map(
        lambda a: jax.block_until_ready(a) if isinstance(a, jax.Array) else a,
        packed)

    y = multi_target_prediction_head(x, packed)
    y = jax.block_until_ready(y)

    y_ref = _reference(x, raw, NUM_LAYERS, compute_dtype=W_DTYPE)
    assert y.shape == (B, NUM_TARGETS), y.shape
    assert jnp.allclose(y, y_ref, atol=1e-2, rtol=1e-2), (
        "mismatch vs reference", jnp.max(jnp.abs(y - y_ref)))

    print("KERNEL_OK")
</pallas_src>

<mosaic_0001>
module attributes {stable_mosaic.version = 11 : i64} {
  func.func @_multi_head_mlp_kernel(%arg0: memref<8x32xf32, #tpu.memory_space<vmem>>, %arg1: memref<304x384xbf16, #tpu.memory_space<vmem>>, %arg2: memref<385x3xbf16, #tpu.memory_space<vmem>>, %arg3: memref<8x3xf32, #tpu.memory_space<vmem>>) attributes {dimension_semantics = [], scalar_prefetch = 0 : i64, scratch_operands = 0 : i64, tpu.core_type = #tpu.core_type<tc>} {
    %c0 = arith.constant 0 : index
    %c0_0 = arith.constant 0 : index
    %0 = vector.load %arg1[%c0, %c0_0] : memref<304x384xbf16, #tpu.memory_space<vmem>>, vector<16x384xbf16>
    %1 = arith.extf %0 : vector<16x384xbf16> to vector<16x384xf32>
    %2 = vector.extract_strided_slice %1 {offsets = [0, 0], sizes = [1, 384], strides = [1, 1]} : vector<16x384xf32> to vector<1x384xf32>
    %c0_1 = arith.constant 0 : index
    %c0_2 = arith.constant 0 : index
    %3 = vector.load %arg0[%c0_1, %c0_2] : memref<8x32xf32, #tpu.memory_space<vmem>>, vector<8x32xf32>
    %4 = arith.truncf %3 : vector<8x32xf32> to vector<8x32xbf16>
    %c16 = arith.constant 16 : index
    %c0_3 = arith.constant 0 : index
    %5 = vector.load %arg1[%c16, %c0_3] : memref<304x384xbf16, #tpu.memory_space<vmem>>, vector<32x384xbf16>
    %cst = arith.constant dense<0.000000e+00> : vector<8x384xf32>
    %6 = tpu.matmul %4, %5, %cst {dimension_numbers = #tpu.dot_dimension_numbers<[1], [0], [0], [1], [0, 0, 1, 1], [], []>} : vector<8x32xbf16>, vector<32x384xbf16>, vector<8x384xf32> -> vector<8x384xf32>
    %7 = vector.broadcast %2 : vector<1x384xf32> to vector<8x384xf32>
    %8 = arith.addf %6, %7 : vector<8x384xf32>
    %cst_4 = arith.constant 0.000000e+00 : f32
    %9 = vector.broadcast %cst_4 : f32 to vector<8x384xf32>
    %10 = arith.maximumf %8, %9 : vector<8x384xf32>
    %11 = vector.extract_strided_slice %1 {offsets = [1, 0], sizes = [1, 384], strides = [1, 1]} : vector<16x384xf32> to vector<1x384xf32>
    %c48 = arith.constant 48 : index
    %c0_5 = arith.constant 0 : index
    %12 = vector.load %arg1[%c48, %c0_5] : memref<304x384xbf16, #tpu.memory_space<vmem>>, vector<128x128xbf16>
    %13 = vector.extract_strided_slice %10 {offsets = [0, 0], sizes = [8, 128], strides = [1, 1]} : vector<8x384xf32> to vector<8x128xf32>
    %14 = arith.truncf %13 : vector<8x128xf32> to vector<8x128xbf16>
    %cst_6 = arith.constant dense<0.000000e+00> : vector<8x128xf32>
    %15 = tpu.matmul %14, %12, %cst_6 {dimension_numbers = #tpu.dot_dimension_numbers<[1], [0], [0], [1], [0, 0, 1, 1], [], []>} : vector<8x128xbf16>, vector<128x128xbf16>, vector<8x128xf32> -> vector<8x128xf32>
    %c48_7 = arith.constant 48 : index
    %c128 = arith.constant 128 : index
    %16 = vector.load %arg1[%c48_7, %c128] : memref<304x384xbf16, #tpu.memory_space<vmem>>, vector<128x128xbf16>
    %17 = vector.extract_strided_slice %10 {offsets = [0, 128], sizes = [8, 128], strides = [1, 1]} : vector<8x384xf32> to vector<8x128xf32>
    %18 = arith.truncf %17 : vector<8x128xf32> to vector<8x128xbf16>
    %cst_8 = arith.constant dense<0.000000e+00> : vector<8x128xf32>
    %19 = tpu.matmul %18, %16, %cst_8 {dimension_numbers = #tpu.dot_dimension_numbers<[1], [0], [0], [1], [0, 0, 1, 1], [], []>} : vector<8x128xbf16>, vector<128x128xbf16>, vector<8x128xf32> -> vector<8x128xf32>
    %c48_9 = arith.constant 48 : index
    %c256 = arith.constant 256 : index
    %20 = vector.load %arg1[%c48_9, %c256] : memref<304x384xbf16, #tpu.memory_space<vmem>>, vector<128x128xbf16>
    %21 = vector.extract_strided_slice %10 {offsets = [0, 256], sizes = [8, 128], strides = [1, 1]} : vector<8x384xf32> to vector<8x128xf32>
    %22 = arith.truncf %21 : vector<8x128xf32> to vector<8x128xbf16>
    %cst_10 = arith.constant dense<0.000000e+00> : vector<8x128xf32>
    %23 = tpu.matmul %22, %20, %cst_10 {dimension_numbers = #tpu.dot_dimension_numbers<[1], [0], [0], [1], [0, 0, 1, 1], [], []>} : vector<8x128xbf16>, vector<128x128xbf16>, vector<8x128xf32> -> vector<8x128xf32>
    %24 = tpu.concatenate %15, %19, %23 in 1 : vector<8x128xf32>, vector<8x128xf32>, vector<8x128xf32> -> vector<8x384xf32>
    %25 = vector.broadcast %11 : vector<1x384xf32> to vector<8x384xf32>
    %26 = arith.addf %24, %25 : vector<8x384xf32>
    %cst_11 = arith.constant 0.000000e+00 : f32
    %27 = vector.broadcast %cst_11 : f32 to vector<8x384xf32>
    %28 = arith.maximumf %26, %27 : vector<8x384xf32>
    %29 = vector.extract_strided_slice %1 {offsets = [2, 0], sizes = [1, 384], strides = [1, 1]} : vector<16x384xf32> to vector<1x384xf32>
    %c176 = arith.constant 176 : index
    %c0_12 = arith.constant 0 : index
    %30 = vector.load %arg1[%c176, %c0_12] : memref<304x384xbf16, #tpu.memory_space<vmem>>, vector<128x128xbf16>
    %31 = vector.extract_strided_slice %28 {offsets = [0, 0], sizes = [8, 128], strides = [1, 1]} : vector<8x384xf32> to vector<8x128xf32>
    %32 = arith.truncf %31 : vector<8x128xf32> to vector<8x128xbf16>
    %cst_13 = arith.constant dense<0.000000e+00> : vector<8x128xf32>
    %33 = tpu.matmul %32, %30, %cst_13 {dimension_numbers = #tpu.dot_dimension_numbers<[1], [0], [0], [1], [0, 0, 1, 1], [], []>} : vector<8x128xbf16>, vector<128x128xbf16>, vector<8x128xf32> -> vector<8x128xf32>
    %c176_14 = arith.constant 176 : index
    %c128_15 = arith.constant 128 : index
    %34 = vector.load %arg1[%c176_14, %c128_15] : memref<304x384xbf16, #tpu.memory_space<vmem>>, vector<128x128xbf16>
    %35 = vector.extract_strided_slice %28 {offsets = [0, 128], sizes = [8, 128], strides = [1, 1]} : vector<8x384xf32> to vector<8x128xf32>
    %36 = arith.truncf %35 : vector<8x128xf32> to vector<8x128xbf16>
    %cst_16 = arith.constant dense<0.000000e+00> : vector<8x128xf32>
    %37 = tpu.matmul %36, %34, %cst_16 {dimension_numbers = #tpu.dot_dimension_numbers<[1], [0], [0], [1], [0, 0, 1, 1], [], []>} : vector<8x128xbf16>, vector<128x128xbf16>, vector<8x128xf32> -> vector<8x128xf32>
    %c176_17 = arith.constant 176 : index
    %c256_18 = arith.constant 256 : index
    %38 = vector.load %arg1[%c176_17, %c256_18] : memref<304x384xbf16, #tpu.memory_space<vmem>>, vector<128x128xbf16>
    %39 = vector.extract_strided_slice %28 {offsets = [0, 256], sizes = [8, 128], strides = [1, 1]} : vector<8x384xf32> to vector<8x128xf32>
    %40 = arith.truncf %39 : vector<8x128xf32> to vector<8x128xbf16>
    %cst_19 = arith.constant dense<0.000000e+00> : vector<8x128xf32>
    %41 = tpu.matmul %40, %38, %cst_19 {dimension_numbers = #tpu.dot_dimension_numbers<[1], [0], [0], [1], [0, 0, 1, 1], [], []>} : vector<8x128xbf16>, vector<128x128xbf16>, vector<8x128xf32> -> vector<8x128xf32>
    %42 = tpu.concatenate %33, %37, %41 in 1 : vector<8x128xf32>, vector<8x128xf32>, vector<8x128xf32> -> vector<8x384xf32>
    %43 = vector.broadcast %29 : vector<1x384xf32> to vector<8x384xf32>
    %44 = arith.addf %42, %43 : vector<8x384xf32>
    %cst_20 = arith.constant 0.000000e+00 : f32
    %45 = vector.broadcast %cst_20 : f32 to vector<8x384xf32>
    %46 = arith.maximumf %44, %45 : vector<8x384xf32>
    %c0_21 = arith.constant 0 : index
    %c0_22 = arith.constant 0 : index
    %47 = vector.load %arg2[%c0_21, %c0_22] : memref<385x3xbf16, #tpu.memory_space<vmem>>, vector<385x3xbf16>
    %48 = arith.truncf %46 : vector<8x384xf32> to vector<8x384xbf16>
    %49 = vector.extract_strided_slice %47 {offsets = [0, 0], sizes = [384, 3], strides = [1, 1]} : vector<385x3xbf16> to vector<384x3xbf16>
    %cst_23 = arith.constant dense<0.000000e+00> : vector<8x3xf32>
    %50 = tpu.matmul %48, %49, %cst_23 {dimension_numbers = #tpu.dot_dimension_numbers<[1], [0], [0], [1], [0, 0, 1, 1], [], []>} : vector<8x384xbf16>, vector<384x3xbf16>, vector<8x3xf32> -> vector<8x3xf32>
    %51 = vector.extract_strided_slice %47 {offsets = [384, 0], sizes = [1, 3], strides = [1, 1]} : vector<385x3xbf16> to vector<1x3xbf16>
    %52 = arith.extf %51 : vector<1x3xbf16> to vector<1x3xf32>
    %53 = vector.broadcast %52 : vector<1x3xf32> to vector<8x3xf32>
    %54 = arith.addf %50, %53 : vector<8x3xf32>
    %c0_24 = arith.constant 0 : index
    %c0_25 = arith.constant 0 : index
    %55 = vector.load %arg3[%c0_24, %c0_25] : memref<8x3xf32, #tpu.memory_space<vmem>>, vector<8x3xf32>
    tpu.vector_store %arg3[%c0_24, %c0_25], %54 {strides = array<i32>} : memref<8x3xf32, #tpu.memory_space<vmem>>, vector<8x3xf32>,
    return
  }
}

</mosaic_0001>

<bundles_post_ra>
// kernel: tpu_custom_call.1
= control target key start
LH: loop header
LB: loop body
LE: loop exit
PB: predicated region body
PF: predicated region fallthrough
CT: control target
= control target key end

     0   :  { %8 = vsyncpa [#allocation3], 0  ;;  %s1556_s12 = smov [#allocation2]   ;;  %s1780_s0 = inlined_call_operand.vmem [shape: f32[8,32], index: 0, kind: input, shape index: {}]   ;;  %s1781_s1 = inlined_call_operand.hbm [shape: bf16[304,384], index: 1, kind: input, shape index: {}]   ;;  %s1782_s2 = inlined_call_operand.vmem [shape: bf16[385,3], index: 2, kind: input, shape index: {}]   ;;  %s1783_s3 = inlined_call_operand.vmem [shape: f32[8,3], index: 3, kind: output, shape index: {}]  }
   0x1   :  { %s16_s13 = sshll.u32 %s1556_s12, 4  ;;  %s1532_s16 = scalar_lea.hbm %s1781_s1, 7296  ;;  %s17_s13 = int_to_ptr.vmem [resolvable:$true] %s16_s13 }
   0x2   :  { %p1533_p0 = scmp.ne.s32.totalorder %s1781_s1, %s1532_s16  ;;  %p1536_p1 = scmp.lt.u32.totalorder %s1532_s16, %s1781_s1 }
   0x4   :  { %p1538_p2 = pnand %p1536_p1, %p1533_p0 }
   0x6   :  { %1541 = shalt.err (!%p1538_p2)
}
   0x7   :  { %s1542_s21 = scalar_lea.vmem %s17_s13, 7296  ;;  %p1547_p4 = scmp.lt.s32.totalorder %s17_s13, %s17_s13 }
   0x8   :  { %p1543_p3 = scmp.ne.s32.totalorder %s17_s13, %s1542_s21  ;;  %p1548_p5 = scmp.lt.s32.totalorder %s1542_s21, %s1542_s21 }
   0xa   :  { %p1549_p6 = por %p1548_p5, %p1547_p4 }
   0xc   :  { %p1550_p7 = pnand %p1549_p6, %p1543_p3 }
   0xe   :  { %1553 = shalt.err (!%p1550_p7)
}
   0xf   :  { %s1557_s22 = smov 192   ;;  %s1558_s23 = smov 12  }
  0x10   :  { %22 = dma.hbm_to_vmem [thread:$0]  %s1781_s1, 7296, %s17_s13, [#allocation3], %s1557_s22, %s1557_s22, %s1558_s23  }
  0x11   :  { %1554 = dma.done.wait [#allocation3], 7296  }
  0x12   :  { %1555 = vsyncadd [#allocation3], 4294960000  ;;  %v1559_v0 = vmov 0   ;;  %v1560_v1 = vmov 0.0   ;;  %vm1561_vm0 = vmmov 0   ;;  %v34_v6 = vld [vmem:[%s1780_s0] sm:$0xff]  ;;  %v44_v26 = vlaneseq }
  0x13   :  { %124 = vmatprep.mubr.bf16.mxu0 %v1559_v0  ;;  %1298 = vmatprep.subr.bf16.mxu1 %v1560_v1  ;;  %v1452_v2 = vld [vmem:[#allocation2 + $0x1c] ss:$12 sps:$4 sm:$0xff]   ;;  %v1454_v3 = vld [vmem:[#allocation2 + $0x18] ss:$12 sps:$4 sm:$0xff]   ;;  %v1455_v4 = vld [vmem:[#allocation2 + $0x34] ss:$12 sps:$4 sm:$0xff]   ;;  %v35_v9 = vpack.c.bf16 %v34_v6, %v34_v6 }
  0x14   :  { %1302 = vmatprep.mubr.msk.bf16.mxu1 %vm1561_vm0, %v1560_v1  ;;  %92 = vmatprep.subr.bf16.mxu0 %v1452_v2  ;;  %v1457_v5 = vld [vmem:[#allocation2 + $0x30] ss:$12 sps:$4 sm:$0xff]   ;;  %v1458_v7 = vld [vmem:[#allocation2 + $0x20] ss:$12 sps:$4 sm:$0xff]   ;;  %v1459_v8 = vld [vmem:[#allocation2 + $0x38] ss:$12 sps:$4 sm:$0xff]  }
  0x15   :  { %93 = vmatpush1.bf16.msra.mxu0 %v1454_v3  ;;  %1299 = vmatpush3.bf16.msra.mxu1 %v1458_v7  ;;  %vm88_vm1 = vcmask 261120   ;;  %v1460_v10 = vld [vmem:[#allocation2 + $0x48] ss:$12 sps:$4 sm:$0xff]   ;;  %v1461_v11 = vld [vmem:[#allocation2 + $0x4c] ss:$12 sps:$4 sm:$0xff]   ;;  %v1623_v27 = vshrl.u32 %v44_v26, 7 }
  0x16   :  { %94 = vmatprep.subr.bf16.mxu0 %v1455_v4  ;;  %1300 = vmatprep.subr.bf16.mxu1 %v1560_v1  ;;  %v1462_v12 = vld [vmem:[#allocation2 + $0x60] ss:$12 sps:$4 sm:$0xff]   ;;  %v1463_v13 = vld [vmem:[#allocation2 + $0x64] ss:$12 sps:$4 sm:$0xff]   ;;  %v1465_v15 = vld [vmem:[#allocation2 + $0x7c] ss:$12 sps:$4 sm:$0xff]  }
  0x17   :  { %v1464_v14 = vld [vmem:[#allocation2 + $0x78] ss:$12 sps:$4 sm:$0xff]   ;;  %v1466_v16 = vld [vmem:[#allocation2 + $0x90] ss:$12 sps:$4 sm:$0xff]   ;;  %v1467_v17 = vld [vmem:[#allocation2 + $0x94] ss:$12 sps:$4 sm:$0xff]  }
  0x18   :  { %v1468_v18 = vld [vmem:[#allocation2 + $0xa8] ss:$12 sps:$4 sm:$0xff]   ;;  %v1469_v19 = vld [vmem:[#allocation2 + $0xac] ss:$12 sps:$4 sm:$0xff]   ;;  %v1471_v21 = vld [vmem:[#allocation2 + $0xc4] ss:$12 sps:$4 sm:$0xff]  }
  0x19   :  { %95 = vmatpush1.bf16.msra.mxu0 %v1457_v5  ;;  %1301 = vmatpush3.bf16.msra.mxu1 %v1459_v8  ;;  %v1470_v20 = vld [vmem:[#allocation2 + $0xc0] ss:$12 sps:$4 sm:$0xff]   ;;  %v1472_v22 = vld [vmem:[#allocation2 + $0xd8] ss:$12 sps:$4 sm:$0xff]   ;;  %v1473_v23 = vld [vmem:[#allocation2 + $0xdc] ss:$12 sps:$4 sm:$0xff]  }
  0x1a   :  { %1306 = vmatprep.subr.bf16.mxu0 %v1560_v1  ;;  %1326 = vmatprep.subr.bf16.mxu1 %v1560_v1  ;;  %v1474_v24 = vld [vmem:[#allocation2 + $0xf0] ss:$12 sps:$4 sm:$0xff]   ;;  %v1475_v25 = vld [vmem:[#allocation2 + $0xf4] ss:$12 sps:$4 sm:$0xff]   ;;  %v1628_v30 = vsub.s32 0, %v1623_v27  ;;  %vm1123_vm2 = vcmask 23552  }
  0x1b   :  { %v29_v28 = vld [vmem:[#allocation2] sm:$0xff]  ;;  %v1476_v44 = vld [vmem:[#allocation2 + $0x50] ss:$12 sps:$4 sm:$0xff]   ;;  %v1484_v49 = vld [vmem:[#allocation2 + $0x108] ss:$12 sps:$4 sm:$0xff]  }
  0x1c   :  { %1136 = vmatmul.mubr.msk.bf16.vlgmr.msra.gmra.mrb[0].mxu0 %vm88_vm1, %v35_v9  ;;  %1303 = vmatmul.mubr.msk.bf16.vlgmr.msra.gmra.mrb[0].mxu1 %vm88_vm1, %v35_v9  ;;  %v1625_v29 = vunpack.c.l.bf16 %v29_v28  ;;  %v1630_v31 = vunpack.c.h.bf16 %v29_v28  ;;  %v1477_v50 = vld [vmem:[#allocation2 + $0x68] ss:$12 sps:$4 sm:$0xff]   ;;  %v1486_v51 = vld [vmem:[#allocation2 + $0x120] ss:$12 sps:$4 sm:$0xff]   ;;  %v1488_v53 = vld [vmem:[#allocation2 + $0x138] ss:$12 sps:$4 sm:$0xff]  }
  0x1d   :  { %1307 = vmatpush3.bf16.msra.mxu0 %v1460_v10  ;;  %1322 = vmatprep.mubr.msk.bf16.mxu0 %vm1561_vm0, %v1560_v1  ;;  %v1478_v52 = vld [vmem:[#allocation2 + $0x80] ss:$12 sps:$4 sm:$0xff]   ;;  %v1479_v54 = vld [vmem:[#allocation2 + $0x98] ss:$12 sps:$4 sm:$0xff]   ;;  %v30_v55 = vld [vmem:[#allocation2 + $0x8] sm:$0xf] }
  0x1e   :  { %1308 = vmatprep.subr.bf16.mxu0 %v1560_v1  ;;  %1327 = vmatpush3.bf16.msra.mxu1 %v1461_v11  ;;  %v47_v32 = vrot.slane %v1625_v29, %v1628_v30  ;;  %v51_v33 = vrot.slane %v1630_v31, %v1628_v30  ;;  %v1490_v56 = vld [vmem:[#allocation2 + $0x150] ss:$12 sps:$4 sm:$0xff]   ;;  %v1645_v57 = vunpack.c.l.bf16 %v30_v55  ;;  %v1492_v59 = vld [vmem:[#allocation2 + $0x168] ss:$12 sps:$4 sm:$0xff]   ;;  %v1494_v62 = vld [vmem:[#allocation2 + $0x180] ss:$12 sps:$4 sm:$0xff]  }
  0x1f   :  { %1342 = vmatprep.mubr.msk.bf16.mxu1 %vm1561_vm0, %v1560_v1  ;;  %1328 = vmatprep.subr.bf16.mxu1 %v1560_v1  ;;  %v1480_v58 = vld [vmem:[#allocation2 + $0xb0] ss:$12 sps:$4 sm:$0xff]   ;;  %v1481_v61 = vld [vmem:[#allocation2 + $0xc8] ss:$12 sps:$4 sm:$0xff]   ;;  %v1482_v0 = vld [vmem:[#allocation2 + $0xe0] ss:$12 sps:$4 sm:$0xff]  }
  0x20   :  { %v55_v60 = vrot.slane %v1645_v57, %v1628_v30  ;;  %v1496_v2 = vld [vmem:[#allocation2 + $0x198] ss:$12 sps:$4 sm:$0xff]   ;;  %v1489_v8 = vld [vmem:[#allocation2 + $0x13c] ss:$12 sps:$4 sm:$0xff]   ;;  %v1491_v9 = vld [vmem:[#allocation2 + $0x154] ss:$12 sps:$4 sm:$0xff]  }
  0x21   :  { %1309 = vmatpush3.bf16.msra.mxu0 %v1462_v12  ;;  %v1483_v4 = vld [vmem:[#allocation2 + $0xf8] ss:$12 sps:$4 sm:$0xff]   ;;  %v1497_v12 = vld [vmem:[#allocation2 + $0x19c] ss:$12 sps:$4 sm:$0xff]  }
  0x22   :  { %1310 = vmatprep.subr.bf16.mxu0 %v1560_v1  ;;  %1329 = vmatpush3.bf16.msra.mxu1 %v1463_v13  ;;  %v1485_v6 = vld [vmem:[#allocation2 + $0x10c] ss:$12 sps:$4 sm:$0xff]   ;;  %v1487_v7 = vld [vmem:[#allocation2 + $0x124] ss:$12 sps:$4 sm:$0xff]  }
  0x23   :  { %1330 = vmatprep.subr.bf16.mxu1 %v1560_v1  ;;  %v1493_v10 = vld [vmem:[#allocation2 + $0x16c] ss:$12 sps:$4 sm:$0xff]   ;;  %v1495_v11 = vld [vmem:[#allocation2 + $0x184] ss:$12 sps:$4 sm:$0xff]  }
  0x24   :  { %v1498_v13 = vld [vmem:[#allocation2 + $0x1b0] ss:$12 sps:$4 sm:$0xff]  }
  0x25   :  { %1311 = vmatpush3.bf16.msra.mxu0 %v1464_v14  ;;  %v1499_v14 = vld [vmem:[#allocation2 + $0x1b4] ss:$12 sps:$4 sm:$0xff]  }
  0x26   :  { %1312 = vmatprep.subr.bf16.mxu0 %v1560_v1  ;;  %1331 = vmatpush3.bf16.msra.mxu1 %v1465_v15  ;;  %v1508_v15 = vld [vmem:[%s1782_s2 + $0x40] sm:$0xff]  }
  0x27   :  { %1332 = vmatprep.subr.bf16.mxu1 %v1560_v1 }
  0x29   :  { %1313 = vmatpush3.bf16.msra.mxu0 %v1466_v16  ;;  %v1673_v16 = vsub.s32 1, %v1623_v27 }
  0x2a   :  { %1314 = vmatprep.subr.bf16.mxu0 %v1560_v1  ;;  %1333 = vmatpush3.bf16.msra.mxu1 %v1467_v17 }
  0x2b   :  { %1334 = vmatprep.subr.bf16.mxu1 %v1560_v1  ;;  %v494_v17 = vrot.slane %v1625_v29, %v1673_v16  ;;  %v502_v55 = vrot.slane %v1645_v57, %v1673_v16 }
  0x2d   :  { %1315 = vmatpush3.bf16.msra.mxu0 %v1468_v18  ;;  %v498_v18 = vrot.slane %v1630_v31, %v1673_v16 }
  0x2e   :  { %1316 = vmatprep.subr.bf16.mxu0 %v1560_v1  ;;  %1335 = vmatpush3.bf16.msra.mxu1 %v1469_v19 }
  0x2f   :  { %1336 = vmatprep.subr.bf16.mxu1 %v1560_v1 }
  0x31   :  { %1317 = vmatpush3.bf16.msra.mxu0 %v1470_v20 }
  0x32   :  { %1318 = vmatprep.subr.bf16.mxu0 %v1560_v1  ;;  %1337 = vmatpush3.bf16.msra.mxu1 %v1471_v21 }
  0x33   :  { %1338 = vmatprep.subr.bf16.mxu1 %v1560_v1 }
  0x35   :  { %1319 = vmatpush3.bf16.msra.mxu0 %v1472_v22 }
  0x36   :  { %1320 = vmatprep.subr.bf16.mxu0 %v1560_v1  ;;  %1339 = vmatpush3.bf16.msra.mxu1 %v1473_v23 }
  0x37   :  { %1340 = vmatprep.subr.bf16.mxu1 %v1560_v1 }
  0x39   :  { %1321 = vmatpush3.bf16.msra.mxu0 %v1474_v24 }
  0x3a   :  { %1346 = vmatprep.subr.bf16.mxu0 %v1560_v1  ;;  %1341 = vmatpush3.bf16.msra.mxu1 %v1475_v25 }
  0x3b   :  { %1366 = vmatprep.subr.bf16.mxu1 %v1560_v1 }
  0xef   :  { %v126_v34 = vpop.f32.mrb[0].mxu0  ;;  %v167_v39 = vpop.f32.mrb[0].mxu1 }
  0xf0   :  { %v127_v35 = vadd.f32 %v126_v34, %v47_v32  ;;  %v128_v36 = vpop.f32.mrb[1].mxu0  ;;  %v1304_v42 = vpop.f32.mrb[1].mxu1  ;;  %v168_v63 = vadd.f32 %v167_v39, %v55_v60  ;;  %v1510_v39 = vld [vmem:[%s1782_s2 + $0x48] sm:$0xff]  }
  0xf1   :  { %v129_v37 = vadd.f32 %v128_v36, %v51_v33  ;;  %v130_v38 = vpop.f32.mrb[2].mxu0  ;;  %v170_v45 = vpop.f32.mrb[2].mxu1  ;;  %v1512_v42 = vld [vmem:[%s1782_s2 + $0x50] sm:$0xff]  }
  0xf2   :  { %v173_v40 = vmax.f32 %v127_v35, 0.0  ;;  %v131_v41 = vpop.f32.mrb[3].mxu0  ;;  %v1305_v47 = vpop.f32.mrb[3].mxu1  ;;  %v175_v3 = vmax.f32 %v168_v63, 0.0  ;;  %v1500_v35 = vld [vmem:[#allocation2 + $0x110] ss:$12 sps:$4 sm:$0xff]  }
  0xf3   :  { %v174_v43 = vmax.f32 %v129_v37, 0.0  ;;  %v1509_v38 = vld [vmem:[%s1782_s2] sm:$0xff]   ;;  %v1511_v41 = vld [vmem:[%s1782_s2 + $0x8] sm:$0xff]   ;;  %v1514_v45 = vld [vmem:[%s1782_s2 + $0x58] sm:$0xff]  }
  0xf4   :  { %v192_v46 = vpack.c.bf16 %v173_v40, %v173_v40  ;;  %v402_v5 = vpack.c.bf16 %v175_v3, %v175_v3  ;;  %v1501_v40 = vld [vmem:[#allocation2 + $0x128] ss:$12 sps:$4 sm:$0xff]   ;;  %v1515_v47 = vld [vmem:[%s1782_s2 + $0x18] sm:$0xff]  }
  0xf5   :  { %v297_v48 = vpack.c.bf16 %v174_v43, %v174_v43  ;;  %v1502_v43 = vld [vmem:[#allocation2 + $0x140] ss:$12 sps:$4 sm:$0xff]   ;;  %v1521_v3 = vld [vmem:[%s1782_s2 + $0x30] sm:$0xff]  }
  0xf6   :  { %1323 = vmatmul.mubr.bf16.vlgmr.msra.gmra.mrb[4].mxu0 %v192_v46  ;;  %v1503_v46 = vld [vmem:[#allocation2 + $0x158] ss:$12 sps:$4 sm:$0xff]  }
  0xf7   :  { %1347 = vmatpush3.bf16.msra.mxu0 %v1476_v44  ;;  %1343 = vmatmul.mubr.bf16.vlgmr.msra.gmra.mrb[4].mxu1 %v297_v48  ;;  %v1513_v44 = vld [vmem:[%s1782_s2 + $0x10] sm:$0xff]   ;;  %v1516_v48 = vld [vmem:[%s1782_s2 + $0x60] sm:$0xff]  }
  0xf8   :  { %1348 = vmatprep.subr.bf16.mxu0 %v1560_v1  ;;  %1362 = vmatprep.mubr.msk.bf16.mxu0 %vm1561_vm0, %v1560_v1 }
  0xf9   :  { %1367 = vmatpush3.bf16.msra.mxu1 %v1484_v49  ;;  %1382 = vmatprep.mubr.msk.bf16.mxu1 %vm1561_vm0, %v1560_v1  ;;  %v1504_v49 = vld [vmem:[#allocation2 + $0x170] ss:$12 sps:$4 sm:$0xff]  }
  0xfa   :  { %1368 = vmatprep.subr.bf16.mxu1 %v1560_v1 }
  0xfb   :  { %1349 = vmatpush3.bf16.msra.mxu0 %v1477_v50  ;;  %v1517_v50 = vld [vmem:[%s1782_s2 + $0x20] sm:$0xff]  }
  0xfc   :  { %1350 = vmatprep.subr.bf16.mxu0 %v1560_v1 }
  0xfd   :  { %1369 = vmatpush3.bf16.msra.mxu1 %v1486_v51  ;;  %v1518_v51 = vld [vmem:[%s1782_s2 + $0x68] sm:$0xff]  }
  0xfe   :  { %1370 = vmatprep.subr.bf16.mxu1 %v1560_v1 }
  0xff   :  { %1351 = vmatpush3.bf16.msra.mxu0 %v1478_v52  ;;  %v1505_v52 = vld [vmem:[#allocation2 + $0x188] ss:$12 sps:$4 sm:$0xff]  }
 0x100   :  { %1352 = vmatprep.subr.bf16.mxu0 %v1560_v1 }
 0x101   :  { %1371 = vmatpush3.bf16.msra.mxu1 %v1488_v53  ;;  %v1519_v53 = vld [vmem:[%s1782_s2 + $0x28] sm:$0xff]  }
 0x102   :  { %1372 = vmatprep.subr.bf16.mxu1 %v1560_v1 }
 0x103   :  { %1353 = vmatpush3.bf16.msra.mxu0 %v1479_v54  ;;  %v1506_v54 = vld [vmem:[#allocation2 + $0x1a0] ss:$12 sps:$4 sm:$0xff]  }
 0x104   :  { %1354 = vmatprep.subr.bf16.mxu0 %v1560_v1 }
 0x105   :  { %1373 = vmatpush3.bf16.msra.mxu1 %v1490_v56 }
 0x106   :  { %1374 = vmatprep.subr.bf16.mxu1 %v1560_v1 }
 0x107   :  { %1355 = vmatpush3.bf16.msra.mxu0 %v1480_v58  ;;  %v1507_v58 = vld [vmem:[#allocation2 + $0x1b8] ss:$12 sps:$4 sm:$0xff]  }
 0x108   :  { %1356 = vmatprep.subr.bf16.mxu0 %v1560_v1 }
 0x109   :  { %1375 = vmatpush3.bf16.msra.mxu1 %v1492_v59 }
 0x10a   :  { %1376 = vmatprep.subr.bf16.mxu1 %v1560_v1 }
 0x10b   :  { %1357 = vmatpush3.bf16.msra.mxu0 %v1481_v61 }
 0x10c   :  { %1358 = vmatprep.subr.bf16.mxu0 %v1560_v1 }
 0x10d   :  { %1377 = vmatpush3.bf16.msra.mxu1 %v1494_v62 }
 0x10e   :  { %1378 = vmatprep.subr.bf16.mxu1 %v1560_v1 }
 0x10f   :  { %1359 = vmatpush3.bf16.msra.mxu0 %v1482_v0 }
 0x110   :  { %1360 = vmatprep.subr.bf16.mxu0 %v1560_v1 }
 0x111   :  { %1379 = vmatpush3.bf16.msra.mxu1 %v1496_v2  ;;  %v1520_v2 = vld [vmem:[%s1782_s2 + $0x70] sm:$0xff]  }
 0x112   :  { %1380 = vmatprep.subr.bf16.mxu1 %v1560_v1 }
 0x113   :  { %1361 = vmatpush3.bf16.msra.mxu0 %v1483_v4  ;;  %v1522_v4 = vld [vmem:[%s1782_s2 + $0x78] sm:$0xff]  }
 0x114   :  { %1386 = vmatprep.subr.bf16.mxu0 %v1560_v1 }
 0x115   :  { %1381 = vmatpush3.bf16.msra.mxu1 %v1498_v13  ;;  %v1531_v13 = vld [vmem:[%s1782_s2 + $0xb8] sm:$0xff]  }
 0x116   :  { %1363 = vmatmul.mubr.bf16.vlgmr.msra.gmra.mrb[8].mxu0 %v402_v5  ;;  %1406 = vmatprep.subr.bf16.mxu1 %v1560_v1  ;;  %v1523_v5 = vld [vmem:[%s1782_s2 + $0x38] sm:$0xff]  }
 0x117   :  { %1387 = vmatpush3.bf16.msra.mxu0 %v1485_v6  ;;  %1402 = vmatprep.mubr.msk.bf16.mxu0 %vm1561_vm0, %v1560_v1  ;;  %v1524_v6 = vld [vmem:[%s1782_s2 + $0x80] sm:$0xff]  }
 0x118   :  { %1388 = vmatprep.subr.bf16.mxu0 %v1560_v1 }
 0x11b   :  { %1389 = vmatpush3.bf16.msra.mxu0 %v1487_v7  ;;  %v1525_v7 = vld [vmem:[%s1782_s2 + $0x88] sm:$0xff]  }
 0x11c   :  { %1390 = vmatprep.subr.bf16.mxu0 %v1560_v1 }
 0x11f   :  { %1391 = vmatpush3.bf16.msra.mxu0 %v1489_v8  ;;  %v1526_v8 = vld [vmem:[%s1782_s2 + $0x90] sm:$0xff]  }
 0x120   :  { %1392 = vmatprep.subr.bf16.mxu0 %v1560_v1 }
 0x123   :  { %1393 = vmatpush3.bf16.msra.mxu0 %v1491_v9  ;;  %v1527_v9 = vld [vmem:[%s1782_s2 + $0x98] sm:$0xff]  }
 0x124   :  { %1394 = vmatprep.subr.bf16.mxu0 %v1560_v1 }
 0x127   :  { %1395 = vmatpush3.bf16.msra.mxu0 %v1493_v10  ;;  %v1528_v10 = vld [vmem:[%s1782_s2 + $0xa0] sm:$0xff]  }
 0x128   :  { %1396 = vmatprep.subr.bf16.mxu0 %v1560_v1 }
 0x12b   :  { %1397 = vmatpush3.bf16.msra.mxu0 %v1495_v11  ;;  %v1529_v11 = vld [vmem:[%s1782_s2 + $0xa8] sm:$0xff]  }
 0x12c   :  { %1398 = vmatprep.subr.bf16.mxu0 %v1560_v1 }
 0x12f   :  { %1399 = vmatpush3.bf16.msra.mxu0 %v1497_v12  ;;  %v1530_v12 = vld [vmem:[%s1782_s2 + $0xb0] sm:$0xff]  }
 0x130   :  { %1400 = vmatprep.subr.bf16.mxu0 %v1560_v1 }
 0x133   :  { %1401 = vmatpush3.bf16.msra.mxu0 %v1499_v14  ;;  %v826_v14 = vsub.s32 2, %v1623_v27 }
 0x134   :  { %1267 = vmatprep.subr.bf16.mxu0 %v1508_v15 }
 0x135   :  { %v827_v15 = vrot.slane %v1625_v29, %v826_v14  ;;  %v831_v16 = vrot.slane %v1630_v31, %v826_v14  ;;  %v835_v27 = vrot.slane %v1645_v57, %v826_v14 }
 0x1c9   :  { %v275_v19 = vpop.f32.mrb[4].mxu0 }
 0x1ca   :  { %v503_v20 = vadd.f32 %v494_v17, %v275_v19  ;;  %v1324_v21 = vpop.f32.mrb[5].mxu0  ;;  %v380_v22 = vpop.f32.mrb[4].mxu1 }
 0x1cb   :  { %v504_v23 = vadd.f32 %v498_v18, %v380_v22  ;;  %v278_v24 = vpop.f32.mrb[6].mxu0  ;;  %v1344_v25 = vpop.f32.mrb[5].mxu1 }
 0x1cc   :  { %v506_v26 = vmax.f32 %v503_v20, 0.0  ;;  %v1325_v28 = vpop.f32.mrb[7].mxu0  ;;  %v383_v32 = vpop.f32.mrb[6].mxu1 }
 0x1cd   :  { %v507_v33 = vmax.f32 %v504_v23, 0.0  ;;  %v1345_v34 = vpop.f32.mrb[7].mxu1 }
 0x1ce   :  { %v525_v36 = vpack.c.bf16 %v506_v26, %v506_v26 }
 0x1cf   :  { %v630_v37 = vpack.c.bf16 %v507_v33, %v507_v33 }
 0x1d0   :  { %1383 = vmatmul.mubr.bf16.vlgmr.msra.gmra.mrb[8].mxu1 %v525_v36 }
 0x1d1   :  { %1407 = vmatpush3.bf16.msra.mxu1 %v1500_v35  ;;  %1403 = vmatmul.mubr.bf16.vlgmr.msra.gmra.mrb[12].mxu0 %v630_v37 }
 0x1d2   :  { %1408 = vmatprep.subr.bf16.mxu1 %v1560_v1  ;;  %1422 = vmatprep.mubr.msk.bf16.mxu1 %vm1561_vm0, %v1560_v1 }
 0x1d3   :  { %1268 = vmatpush3.bf16.msra.mxu0 %v1509_v38 }
 0x1d4   :  { %1269 = vmatprep.subr.bf16.mxu0 %v1510_v39 }
 0x1d5   :  { %1409 = vmatpush3.bf16.msra.mxu1 %v1501_v40 }
 0x1d6   :  { %1410 = vmatprep.subr.bf16.mxu1 %v1560_v1 }
 0x1d7   :  { %1270 = vmatpush3.bf16.msra.mxu0 %v1511_v41 }
 0x1d8   :  { %1271 = vmatprep.subr.bf16.mxu0 %v1512_v42 }
 0x1d9   :  { %1411 = vmatpush3.bf16.msra.mxu1 %v1502_v43 }
 0x1da   :  { %1412 = vmatprep.subr.bf16.mxu1 %v1560_v1 }
 0x1db   :  { %1272 = vmatpush3.bf16.msra.mxu0 %v1513_v44  ;;  %v890_v44 = vld [vmem:[%s1782_s2 + $0xc0] sm:$0x1] }
 0x1dc   :  { %1273 = vmatprep.subr.bf16.mxu0 %v1514_v45  ;;  %v894_v45 = vunpack.c.l.bf16 %v890_v44 }
 0x1dd   :  { %1413 = vmatpush3.bf16.msra.mxu1 %v1503_v46 }
 0x1de   :  { %1414 = vmatprep.subr.bf16.mxu1 %v1560_v1  ;;  %v898_v57 = vrot.slane %v894_v45, %v1628_v30 }
 0x1df   :  { %1274 = vmatpush3.bf16.msra.mxu0 %v1515_v47 }
 0x1e0   :  { %1275 = vmatprep.subr.bf16.mxu0 %v1516_v48 }
 0x1e1   :  { %1415 = vmatpush3.bf16.msra.mxu1 %v1504_v49 }
 0x1e2   :  { %1416 = vmatprep.subr.bf16.mxu1 %v1560_v1 }
 0x1e3   :  { %1276 = vmatpush3.bf16.msra.mxu0 %v1517_v50 }
 0x1e4   :  { %1277 = vmatprep.subr.bf16.mxu0 %v1518_v51 }
 0x1e5   :  { %1417 = vmatpush3.bf16.msra.mxu1 %v1505_v52 }
 0x1e6   :  { %1418 = vmatprep.subr.bf16.mxu1 %v1560_v1 }
 0x1e7   :  { %1278 = vmatpush3.bf16.msra.mxu0 %v1519_v53 }
 0x1e8   :  { %1279 = vmatprep.subr.bf16.mxu0 %v1520_v2 }
 0x1e9   :  { %v485_v56 = vpop.f32.mrb[8].mxu0  ;;  %1419 = vmatpush3.bf16.msra.mxu1 %v1506_v54 }
 0x1ea   :  { %v505_v59 = vadd.f32 %v502_v55, %v485_v56  ;;  %v1364_v60 = vpop.f32.mrb[9].mxu0  ;;  %1420 = vmatprep.subr.bf16.mxu1 %v1560_v1 }
 0x1eb   :  { %v488_v61 = vpop.f32.mrb[10].mxu0  ;;  %1280 = vmatpush3.bf16.msra.mxu0 %v1521_v3 }
 0x1ec   :  { %v508_v62 = vmax.f32 %v505_v59, 0.0  ;;  %v1365_v63 = vpop.f32.mrb[11].mxu0  ;;  %1281 = vmatprep.subr.bf16.mxu0 %v1522_v4 }
 0x1ed   :  { %1421 = vmatpush3.bf16.msra.mxu1 %v1507_v58 }
 0x1ee   :  { %v735_v0 = vpack.c.bf16 %v508_v62, %v508_v62  ;;  %1426 = vmatprep.subr.bf16.mxu1 %v1560_v1 }
 0x1ef   :  { %1282 = vmatpush3.bf16.msra.mxu0 %v1523_v5 }
 0x1f0   :  { %1423 = vmatmul.mubr.bf16.vlgmr.msra.gmra.mrb[12].mxu1 %v735_v0 }
 0x1f1   :  { %1442 = vmatprep.mubr.msk.bf16.mxu1 %vm1561_vm0, %v1560_v1  ;;  %1427 = vmatpush3.bf16.msra.mxu1 %v1524_v6 }
 0x1f2   :  { %1428 = vmatprep.subr.bf16.mxu1 %v1560_v1 }
 0x1f5   :  { %1429 = vmatpush3.bf16.msra.mxu1 %v1525_v7 }
 0x1f6   :  { %1430 = vmatprep.subr.bf16.mxu1 %v1560_v1 }
 0x1f9   :  { %1431 = vmatpush3.bf16.msra.mxu1 %v1526_v8 }
 0x1fa   :  { %1432 = vmatprep.subr.bf16.mxu1 %v1560_v1 }
 0x1fd   :  { %1433 = vmatpush3.bf16.msra.mxu1 %v1527_v9 }
 0x1fe   :  { %1434 = vmatprep.subr.bf16.mxu1 %v1560_v1 }
 0x201   :  { %1435 = vmatpush3.bf16.msra.mxu1 %v1528_v10 }
 0x202   :  { %1436 = vmatprep.subr.bf16.mxu1 %v1560_v1 }
 0x205   :  { %1437 = vmatpush3.bf16.msra.mxu1 %v1529_v11 }
 0x206   :  { %1438 = vmatprep.subr.bf16.mxu1 %v1560_v1 }
 0x209   :  { %1439 = vmatpush3.bf16.msra.mxu1 %v1530_v12 }
 0x20a   :  { %1440 = vmatprep.subr.bf16.mxu1 %v1560_v1 }
 0x20d   :  { %1441 = vmatpush3.bf16.msra.mxu1 %v1531_v13 }
 0x2a3   :  { %v608_v17 = vpop.f32.mrb[8].mxu1 }
 0x2a4   :  { %v836_v18 = vadd.f32 %v827_v15, %v608_v17  ;;  %v1384_v19 = vpop.f32.mrb[9].mxu1  ;;  %v713_v20 = vpop.f32.mrb[12].mxu0 }
 0x2a5   :  { %v837_v21 = vadd.f32 %v831_v16, %v713_v20  ;;  %v611_v22 = vpop.f32.mrb[10].mxu1  ;;  %v1404_v23 = vpop.f32.mrb[13].mxu0 }
 0x2a6   :  { %v839_v24 = vmax.f32 %v836_v18, 0.0  ;;  %v1385_v1 = vpop.f32.mrb[11].mxu1  ;;  %v716_v25 = vpop.f32.mrb[14].mxu0 }
 0x2a7   :  { %v840_v26 = vmax.f32 %v837_v21, 0.0  ;;  %v1405_v28 = vpop.f32.mrb[15].mxu0 }
 0x2a8   :  { %v891_v33 = vpack.c.bf16 %v839_v24, %v839_v24 }
 0x2a9   :  { %v892_v32 = vpack.c.bf16 %v840_v26, %v840_v26 }
 0x2ab   :  { %1075 = vmatprep.mubr.bf16.mxu0 %v892_v32 }
 0x2ac   :  { %1076 = vmatmul.mubr.bf16.vlgmr.msra.gmra.mrb[16].mxu0 %v891_v33 }
 0x2c3   :  { %v818_v29 = vpop.f32.mrb[12].mxu1 }
 0x2c4   :  { %v838_v31 = vadd.f32 %v835_v27, %v818_v29  ;;  %v1424_v34 = vpop.f32.mrb[13].mxu1 }
 0x2c5   :  { %v821_v35 = vpop.f32.mrb[14].mxu1 }
 0x2c6   :  { %v841_v36 = vmax.f32 %v838_v31, 0.0  ;;  %v1425_v37 = vpop.f32.mrb[15].mxu1 }
 0x2c8   :  { %v893_v38 = vpack.c.bf16 %v841_v36, %v841_v36 }
 0x2ca   :  { %1443 = vmatmul.mubr.bf16.vlgmr.msra.gmra.mrb[16].mxu1 %v893_v38 }
 0x37f   :  { %v1283_v39 = vpop.f32.mrb[16].mxu0 }
 0x380   :  { %v1284_v40 = vpop.f32.mrb[17].mxu0 }
 0x381   :  { %v1285_v41 = vadd.f32 %v1284_v40, %v1283_v39  ;;  %v1286_v42 = vpop.f32.mrb[18].mxu0 }
 0x382   :  { %v1287_v43 = vpop.f32.mrb[19].mxu0 }
 0x383   :  { %v1078_v46 = vadd.f32 %v1285_v41, %v898_v57 }
 0x39d   :  { %v1117_v47 = vpop.f32.mrb[16].mxu1 }
 0x39e   :  { %v1118_v48 = vadd.f32 %v1117_v47, %v1078_v46  ;;  %v1444_v49 = vpop.f32.mrb[17].mxu1 }
 0x39f   :  { %v1120_v50 = vpop.f32.mrb[18].mxu1 }
 0x3a0   :  { %1124 = vst.msk [vmem:[%s1783_s3] sm:$0xff] %vm1123_vm2, %v1118_v48  ;;  %v1445_v51 = vpop.f32.mrb[19].mxu1 }
 0x3a1   :  { %1129 = vsyncpa [#allocation3], 1 }

</bundles_post_ra>
